<compile_context>
chip_gen: v7x
topology: tpu7x:2x2x1
jax: 0.10.0
libtpu: 0.0.40
codegen_flags: <defaults>
</compile_context>

<pallas_src>
import jax
import jax.numpy as jnp
from jax.experimental import pallas as pl
from jax.experimental.pallas import tpu as pltpu

NUM_CLASSES = 11      # 9 raw logits + 2 sigmoid-activated columns
NUM_RAW = 9


def task_classifier_kernel(x_ref, w_ref, b_ref, o_ref):
    # x_ref: (TB, F)   w_ref: (F, 11)   b_ref: (1, 11)   o_ref: (TB, 11)
    z = jnp.dot(x_ref[...], w_ref[...],
                preferred_element_type=jnp.float32) + b_ref[...]
    # Columns 9..10 get a sigmoid; columns 0..8 pass through.
    col = jax.lax.broadcasted_iota(jnp.int32, (1, z.shape[1]), 1)
    o_ref[...] = jnp.where(col >= NUM_RAW, jax.nn.sigmoid(z), z).astype(o_ref.dtype)


def _vmem_capacity_bytes():
    try:
        return int(pltpu.get_tpu_info().vmem_capacity_bytes)
    except Exception:
        # Conservative fallback: assume v7x-sized per-core VMEM (64 MiB).
        return 64 * 1024 * 1024


def _pick_batch_tile(B, F, x_itemsize):
    """Batch tile: multiple of 8, generation-aware VMEM budget, >=2 tiles
    for megacore when B is large enough."""
    cap = _vmem_capacity_bytes()
    budget = (cap * 3) // 8            # ~24 MiB on v7x, ~48 MiB on v5e/v6e
    # Double-buffered working set per batch row (x tile + out tile) plus the
    # resident (but still double-buffered) weight and bias.
    fixed = 2 * F * NUM_CLASSES * 4 + 2 * NUM_CLASSES * 4
    per_row = 2 * (F * x_itemsize + NUM_CLASSES * 4)
    tb = max((budget - fixed) // max(per_row, 1), 8)
    tb = min(tb, 4096)
    # Keep at least 2 batch tiles so v7x's two TensorCores both get work.
    if B > 16:
        tb = min(tb, ((pl.cdiv(B, 2) + 7) // 8) * 8)
    tb = max(8, (tb // 8) * 8)
    b_up = ((B + 7) // 8) * 8          # don't exceed (rounded-up) batch
    return min(tb, b_up), cap


def task_classifier(x, weight, bias):
    """x: (B, F); weight: (11, F) (PyTorch layout); bias: (11,)."""
    B, F = x.shape
    # One-time parameter prep (outside the hot kernel): transpose to (F, 11).
    w_t = weight.T.astype(jnp.float32)                      # (F, 11)
    b_row = bias.astype(jnp.float32).reshape(1, NUM_CLASSES)

    TB, vmem_cap = _pick_batch_tile(B, F, jnp.dtype(x.dtype).itemsize)
    grid = (pl.cdiv(B, TB),)
    vmem_limit = vmem_cap // 2   # >= tile budget, <= physical/default scoped

    return pl.pallas_call(
        task_classifier_kernel,
        out_shape=jax.ShapeDtypeStruct((B, NUM_CLASSES), x.dtype),
        grid_spec=pltpu.PrefetchScalarGridSpec(
            num_scalar_prefetch=0,
            grid=grid,
            in_specs=[
                pl.BlockSpec((TB, F), lambda i: (i, 0)),            # x tiles
                pl.BlockSpec((F, NUM_CLASSES), lambda i: (0, 0)),   # weight (resident)
                pl.BlockSpec((1, NUM_CLASSES), lambda i: (0, 0)),   # bias (resident)
            ],
            out_specs=pl.BlockSpec((TB, NUM_CLASSES), lambda i: (i, 0)),
        ),
        compiler_params=pltpu.CompilerParams(
            dimension_semantics=("parallel",),
            vmem_limit_bytes=vmem_limit),
    )(x, w_t, b_row)


def _reference(x, weight, bias):
    z = x @ weight.T + bias
    return jnp.concatenate([z[:, :NUM_RAW], jax.nn.sigmoid(z[:, NUM_RAW:])],
                           axis=1)


if __name__ == "__main__":
    key = jax.random.PRNGKey(0)
    k_x, k_w, k_b = jax.random.split(key, 3)

    batch = 8
    in_features = 32

    x = jax.random.normal(k_x, (batch, in_features), dtype=jnp.float32)
    # Deterministic "Linear(in_features, 11)" parameters (PyTorch layout:
    # weight (out, in), bias (out,)), uniform(-1/sqrt(F), 1/sqrt(F)) like
    # nn.Linear's default init.
    bound = 1.0 / jnp.sqrt(jnp.float32(in_features))
    weight = jax.random.uniform(k_w, (NUM_CLASSES, in_features),
                                minval=-bound, maxval=bound,
                                dtype=jnp.float32)
    bias = jax.random.uniform(k_b, (NUM_CLASSES,),
                              minval=-bound, maxval=bound,
                              dtype=jnp.float32)

    out = task_classifier(x, weight, bias)
    out = jax.block_until_ready(out)

    ref = _reference(x, weight, bias)
    assert out.shape == (batch, NUM_CLASSES)
    assert jnp.allclose(out, ref, atol=1e-5, rtol=1e-5), "mismatch vs reference"

    print("KERNEL_OK")
</pallas_src>

<mosaic_0001>
module attributes {stable_mosaic.version = 11 : i64} {
  func.func @task_classifier_kernel(%arg0: i32, %arg1: memref<8x32xf32, #tpu.memory_space<vmem>>, %arg2: memref<32x11xf32, #tpu.memory_space<vmem>>, %arg3: memref<1x11xf32, #tpu.memory_space<vmem>>, %arg4: memref<8x11xf32, #tpu.memory_space<vmem>>) attributes {dimension_semantics = [#tpu.dimension_semantics<parallel>], iteration_bounds = array<i64: 1>, scalar_prefetch = 0 : i64, scratch_operands = 0 : i64, tpu.core_type = #tpu.core_type<tc>, window_params = [{transform_indices = @transform_0, window_bounds = array<i64: 8, 32>}, {pipeline_mode = #tpu.pipeline_mode<synchronous>, transform_indices = @transform_1, window_bounds = array<i64: 32, 11>}, {pipeline_mode = #tpu.pipeline_mode<synchronous>, transform_indices = @transform_2, window_bounds = array<i64: 1, 11>}, {transform_indices = @transform_3, window_bounds = array<i64: 8, 11>}]} {
    %c0 = arith.constant 0 : index
    %c0_0 = arith.constant 0 : index
    %0 = vector.load %arg1[%c0, %c0_0] : memref<8x32xf32, #tpu.memory_space<vmem>>, vector<8x32xf32>
    %c0_1 = arith.constant 0 : index
    %c0_2 = arith.constant 0 : index
    %1 = vector.load %arg2[%c0_1, %c0_2] : memref<32x11xf32, #tpu.memory_space<vmem>>, vector<32x11xf32>
    %cst = arith.constant dense<0.000000e+00> : vector<8x11xf32>
    %2 = tpu.matmul %0, %1, %cst {dimension_numbers = #tpu.dot_dimension_numbers<[1], [0], [0], [1], [0, 0, 1, 1], [], []>} : vector<8x32xf32>, vector<32x11xf32>, vector<8x11xf32> -> vector<8x11xf32>
    %c0_3 = arith.constant 0 : index
    %c0_4 = arith.constant 0 : index
    %3 = vector.load %arg3[%c0_3, %c0_4] : memref<1x11xf32, #tpu.memory_space<vmem>>, vector<1x11xf32>
    %4 = vector.broadcast %3 : vector<1x11xf32> to vector<8x11xf32>
    %5 = arith.addf %2, %4 : vector<8x11xf32>
    %6 = tpu.iota {dimensions = array<i32: 1>} : vector<1x11xi32>
    %c9_i32 = arith.constant 9 : i32
    %7 = vector.broadcast %c9_i32 : i32 to vector<1x11xi32>
    %8 = arith.cmpi sge, %6, %7 : vector<1x11xi32>
    %9 = arith.negf %5 : vector<8x11xf32>
    %10 = math.exp %9 : vector<8x11xf32>
    %cst_5 = arith.constant 1.000000e+00 : f32
    %11 = vector.broadcast %cst_5 : f32 to vector<8x11xf32>
    %12 = arith.addf %11, %10 : vector<8x11xf32>
    %13 = arith.divf %11, %12 : vector<8x11xf32>
    %14 = vector.shape_cast %8 : vector<1x11xi1> to vector<1x11xi1>
    %15 = vector.broadcast %14 : vector<1x11xi1> to vector<8x11xi1>
    %16 = arith.select %15, %13, %5 : vector<8x11xi1>, vector<8x11xf32>
    %c0_6 = arith.constant 0 : index
    %c0_7 = arith.constant 0 : index
    %17 = vector.load %arg4[%c0_6, %c0_7] : memref<8x11xf32, #tpu.memory_space<vmem>>, vector<8x11xf32>
    tpu.vector_store %arg4[%c0_6, %c0_7], %16 {strides = array<i32>} : memref<8x11xf32, #tpu.memory_space<vmem>>, vector<8x11xf32>,
    return
  }
  func.func @transform_0(%arg0: i32) -> (i32, i32) {
    %c0_i32 = arith.constant 0 : i32
    %c0_i32_0 = arith.constant 0 : i32
    return %arg0, %c0_i32 : i32, i32
  }
  func.func @transform_1(%arg0: i32) -> (i32, i32) {
    %c0_i32 = arith.constant 0 : i32
    %c0_i32_0 = arith.constant 0 : i32
    %c0_i32_1 = arith.constant 0 : i32
    return %c0_i32, %c0_i32_0 : i32, i32
  }
  func.func @transform_2(%arg0: i32) -> (i32, i32) {
    %c0_i32 = arith.constant 0 : i32
    %c0_i32_0 = arith.constant 0 : i32
    %c0_i32_1 = arith.constant 0 : i32
    return %c0_i32, %c0_i32_0 : i32, i32
  }
  func.func @transform_3(%arg0: i32) -> (i32, i32) {
    %c0_i32 = arith.constant 0 : i32
    %c0_i32_0 = arith.constant 0 : i32
    return %arg0, %c0_i32 : i32, i32
  }
}

</mosaic_0001>

<bundles_post_ra>
// kernel: tpu_custom_call.1
= control target key start
LH: loop header
LB: loop body
LE: loop exit
PB: predicated region body
PF: predicated region fallthrough
CT: control target
= control target key end

     0   :  { %v186_v3 = vmov 0.0|0.0   ;;  %vm187_vm0 = vmmov 0   ;;  %v188_v6 = vmov 0.0   ;;  %s240_s0 = inlined_call_operand.vmem [shape: f32[8,32], index: 0, kind: input, shape index: {}]   ;;  %s241_s1 = inlined_call_operand.vmem [shape: f32[32,11], index: 1, kind: input, shape index: {}]   ;;  %s242_s2 = inlined_call_operand.vmem [shape: f32[1,11], index: 2, kind: input, shape index: {}]   ;;  %s243_s3 = inlined_call_operand.hbm [shape: f32[8,11], index: 3, kind: output, shape index: {}]  }
   0x1   :  { %v16_v0 = vld [vmem:[%s241_s1] sm:$0xff]  ;;  %v17_v1 = vld [vmem:[%s241_s1 + $0x8] sm:$0xff]  ;;  %v18_v2 = vld [vmem:[%s241_s1 + $0x10] sm:$0xff]  ;;  %148 = vmatprep.subr.bf16.mxu0 %v186_v3  ;;  %145 = vmatprep.mubr.msk.f32.mxu0 %vm187_vm0, %v188_v6 }
   0x2   :  { %v149_v4 = vpack.c.bf16 %v17_v1, %v16_v0  ;;  %v19_v5 = vld [vmem:[%s241_s1 + $0x18] sm:$0xff] }
   0x3   :  { %8 = vsyncpa [#allocation3], 0  ;;  %v152_v7 = vpack.c.bf16 %v19_v5, %v18_v2  ;;  %v15_v8 = vld [vmem:[%s240_s0] sm:$0xff]  ;;  %vm27_vm1 = vcmask 261120   ;;  %v101_v16 = vlaneseq  ;;  %s189_s1 = smov [#allocation2]   ;;  %vm113_vm3 = vcmask 89088  }
   0x4   :  { %150 = vmatpush3.bf16.msra.mxu0 %v149_v4  ;;  %v129_v9 = vld [vmem:[%s242_s2] ss:$0 sm:$0xff]  ;;  %s121_s24 = sshll.u32 %s189_s1, 4  ;;  %s122_s24 = int_to_ptr.vmem [resolvable:$true] %s121_s24 }
   0x5   :  { %151 = vmatprep.subr.bf16.mxu0 %v186_v3  ;;  %v102_v17 = vand.u32 127, %v101_v16  ;;  %s162_s0 = scalar_lea.vmem %s122_s24, 128  ;;  %p167_p1 = scmp.lt.s32.totalorder %s122_s24, %s122_s24 }
   0x6   :  { %p163_p0 = scmp.ne.s32.totalorder %s122_s24, %s162_s0  ;;  %p168_p2 = scmp.lt.s32.totalorder %s162_s0, %s162_s0 }
   0x7   :  { %vm103_vm2 = vcmp.ge.s32.totalorder %v102_v17, 9 }
   0x8   :  { %153 = vmatpush3.bf16.msra.mxu0 %v152_v7  ;;  %p169_p3 = por %p168_p2, %p167_p1 }
   0xa   :  { %p170_p4 = pnand %p169_p3, %p163_p0 }
   0xb   :  { %146 = vmatmul.mubr.msk.f32.vlgmr.msra.gmra.mrb[0].mxu0 %vm27_vm1, %v15_v8 }
  0xde   :  { %v97_v10 = vpop.f32.mrb[0].mxu0 }
  0xdf   :  { %v98_v11 = vadd.f32 %v129_v9, %v97_v10  ;;  %v147_v12 = vpop.f32.mrb[1].mxu0 }
  0xe1   :  { %v131_v13 = vmul.f32 -1.442695, %v98_v11 }
  0xe3   :  { %158 = vpow2.f32 %v131_v13 }
  0xed   :  { %v159_v14 = vpop.eup %158 }
  0xee   :  { %v107_v15 = vadd.f32 1.0, %v159_v14 }
  0xf0   :  { %160 = vrcp.f32 %v107_v15 }
  0xfa   :  { %v161_v18 = vpop.eup %160 }
  0xfb   :  { %v112_v19 = vsel %vm103_vm2, %v161_v18, %v98_v11 }
  0xfc   :  { %114 = vst.msk [vmem:[#allocation2] sm:$0xff] %vm113_vm3, %v112_v19 }
  0xfd   :  { %173 = shalt.err (!%p170_p4)
}
  0xfe   :  { %s174_s26 = scalar_lea.hbm %s243_s3, 128 }
  0xff   :  { %p175_p5 = scmp.ne.s32.totalorder %s243_s3, %s174_s26  ;;  %p178_p6 = scmp.lt.u32.totalorder %s174_s26, %s243_s3 }
 0x101   :  { %p180_p7 = pnand %p178_p6, %p175_p5 }
 0x103   :  { %183 = shalt.err (!%p180_p7)
}
 0x104   :  { %124 = dma.vmem_to_hbm [thread:$0]  %s122_s24, 128, %s243_s3, [#allocation3]  }
 0x105   :  { %184 = dma.done.wait [#allocation3], 128  }
 0x106   :  { %185 = vsyncadd [#allocation3], 4294967168 }
 0x107   :  { %128 = vsyncpa [#allocation3], 1 }

</bundles_post_ra>
